<compile_context>
chip_gen: v6e
topology: v6e:2x2x1
jax: 0.10.0
libtpu: 0.0.40
codegen_flags: <defaults>
</compile_context>

<pallas_src>
import jax
import jax.numpy as jnp
from jax.experimental import pallas as pl
from jax.experimental.pallas import tpu as pltpu

_LANE = 128
_SUBLANE = 8
_VMEM_BUDGET = 48 * 1024 * 1024  # conservative cap that fits v5e / v6e / v7x


def _round_up(x, m):
    return (x + m - 1) // m * m


def _gelu_tanh(x):
    # tanh-approximate GELU (f32 VPU/EUP math on all generations)
    c = jnp.sqrt(2.0 / jnp.pi).astype(x.dtype)
    return 0.5 * x * (1.0 + jnp.tanh(c * (x + 0.044715 * x * x * x)))


def _on_patches_kernel(x_ref, w1_ref, b1_ref, w2_ref, b2_ref, o_ref):
    # x_ref: (TN, S) bf16 row tile; w1: (S, Hp), w2: (Hp, S) bf16 (VMEM resident);
    # b1: (1, Hp) f32; b2: (1, S) f32.  Both dots accumulate in f32 on the MXU.
    h = jnp.dot(x_ref[...], w1_ref[...], preferred_element_type=jnp.float32)
    h = _gelu_tanh(h + b1_ref[...])
    o = jnp.dot(h.astype(w2_ref.dtype), w2_ref[...],
                preferred_element_type=jnp.float32) + b2_ref[...]
    o_ref[...] = o.astype(o_ref.dtype)


def on_patches_forward(x_nchw, w1, b1, w2, b2, *, tile_rows=256,
                       matmul_dtype=jnp.bfloat16):
    """Apply the patch-wise MLP layer exactly like OnPatches.forward.

    x_nchw: (b, c, h, w)
    w1: (S, H), b1: (H,), w2: (H, S), b2: (S,)  with S = h*w
    """
    b, c, h, w = x_nchw.shape
    S = h * w
    H = w1.shape[1]
    assert w1.shape == (S, H) and w2.shape == (H, S)
    assert b1.shape == (H,) and b2.shape == (S,)

    out_dtype = x_nchw.dtype
    N = b * c

    # ---- pad hidden width to a lane-dense multiple of 128 (mathematically exact) ----
    Hp = _round_up(H, _LANE)
    if Hp != H:
        w1 = jnp.pad(w1, ((0, 0), (0, Hp - H)))
        b1 = jnp.pad(b1, (0, Hp - H))
        w2 = jnp.pad(w2, ((0, Hp - H), (0, 0)))

    # ---- choose the row tile: large, 8-aligned, no bigger than needed, and small
    # ---- enough that double-buffered tiles + resident weights fit the VMEM budget ----
    tile_rows = _round_up(max(int(tile_rows), _SUBLANE), _SUBLANE)
    tile_rows = min(tile_rows, max(_LANE, _round_up(N, _LANE)))

    in_b = jnp.dtype(matmul_dtype).itemsize
    out_b = jnp.dtype(out_dtype).itemsize

    def vmem_estimate(tn):
        return (2 * tn * S * in_b              # double-buffered x tile
                + 2 * tn * S * out_b           # double-buffered out tile
                + 2 * 2 * S * Hp * in_b        # w1 + w2 (default 2-deep pipeline)
                + 2 * (Hp + S) * 4             # biases
                + tn * (Hp + S) * 4)           # live f32 intermediates (h, o)

    while tile_rows > _LANE and vmem_estimate(tile_rows) > (_VMEM_BUDGET * 3) // 4:
        tile_rows = _round_up(tile_rows // 2, _SUBLANE)

    vmem_limit = int(min(_VMEM_BUDGET,
                         max(32 * 1024 * 1024,
                             vmem_estimate(tile_rows) + (8 << 20))))

    # ---- pad rows so N divides the tile (no divisibility assert) ----
    Np = _round_up(N, tile_rows)
    x2d = x_nchw.reshape((N, S))
    if Np != N:
        x2d = jnp.pad(x2d, ((0, Np - N), (0, 0)))

    # bf16 matmul operands, f32 accumulation (MXU fast path on v6e/v7x; valid on v5e)
    x2d = x2d.astype(matmul_dtype)
    w1c = w1.astype(matmul_dtype)
    w2c = w2.astype(matmul_dtype)
    b1_2d = b1.reshape((1, Hp)).astype(jnp.float32)
    b2_2d = b2.reshape((1, S)).astype(jnp.float32)

    grid = (Np // tile_rows,)

    # NOTE: the weight/bias index_maps are constant so they stay VMEM-resident; a
    # pipeline_mode=pl.Buffered(1) single-buffer would halve their VMEM, but the
    # default pipelining is kept for portability and the estimate budgets 2x.
    out2d = pl.pallas_call(
        _on_patches_kernel,
        out_shape=jax.ShapeDtypeStruct((Np, S), out_dtype),
        grid_spec=pltpu.PrefetchScalarGridSpec(
            num_scalar_prefetch=0,
            grid=grid,
            in_specs=[
                pl.BlockSpec((tile_rows, S), lambda i: (i, 0)),   # x row tile
                pl.BlockSpec((S, Hp), lambda i: (0, 0)),          # w1 (resident)
                pl.BlockSpec((1, Hp), lambda i: (0, 0)),          # b1
                pl.BlockSpec((Hp, S), lambda i: (0, 0)),          # w2 (resident)
                pl.BlockSpec((1, S), lambda i: (0, 0)),           # b2
            ],
            out_specs=pl.BlockSpec((tile_rows, S), lambda i: (i, 0)),
        ),
        compiler_params=pltpu.CompilerParams(
            dimension_semantics=("parallel",),   # megacore sharding on v7x
            vmem_limit_bytes=vmem_limit,
        ),
    )(x2d, w1c, b1_2d, w2c, b2_2d)

    # L == h*w guaranteed by construction (w2 maps back to S)
    return out2d[:N].reshape((b, c, h, w))


def _reference_forward(x_nchw, w1, b1, w2, b2):
    b, c, h, w = x_nchw.shape
    x2d = x_nchw.reshape((-1, h * w)).astype(jnp.float32)
    hmid = _gelu_tanh(x2d @ w1.astype(jnp.float32) + b1.astype(jnp.float32))
    out = hmid @ w2.astype(jnp.float32) + b2.astype(jnp.float32)
    return out.reshape((b, c, h, w)).astype(x_nchw.dtype)


if __name__ == "__main__":
    # Small shapes consistent with the module's forward (NCHW input).
    B, C, Hh, Ww = 2, 4, 16, 16          # -> N = 8 rows, S = 256 tokens
    S = Hh * Ww
    HID = 32                             # hidden width of the token-mixing MLP

    key = jax.random.PRNGKey(0)
    kx, k1, k2, k3, k4 = jax.random.split(key, 5)

    x = jax.random.normal(kx, (B, C, Hh, Ww), dtype=jnp.float32)
    # deterministic synthetic parameters (Linear(S, HID), Linear(HID, S))
    w1 = jax.random.normal(k1, (S, HID), dtype=jnp.float32) * (1.0 / jnp.sqrt(S))
    b1 = jax.random.normal(k2, (HID,), dtype=jnp.float32) * 0.01
    w2 = jax.random.normal(k3, (HID, S), dtype=jnp.float32) * (1.0 / jnp.sqrt(HID))
    b2 = jax.random.normal(k4, (S,), dtype=jnp.float32) * 0.01

    out = on_patches_forward(x, w1, b1, w2, b2)
    out = jax.block_until_ready(out)

    ref = _reference_forward(x, w1, b1, w2, b2)
    assert out.shape == (B, C, Hh, Ww)
    # bf16 matmul operands (f32 accumulation) -> tolerance reflects input rounding
    assert jnp.allclose(out, ref, atol=5e-2, rtol=5e-2)

    print("KERNEL_OK")
</pallas_src>

<mosaic_0001>
module attributes {stable_mosaic.version = 11 : i64} {
  func.func @_on_patches_kernel(%arg0: i32, %arg1: memref<128x256xbf16, #tpu.memory_space<vmem>>, %arg2: memref<256x128xbf16, #tpu.memory_space<vmem>>, %arg3: memref<1x128xf32, #tpu.memory_space<vmem>>, %arg4: memref<128x256xbf16, #tpu.memory_space<vmem>>, %arg5: memref<1x256xf32, #tpu.memory_space<vmem>>, %arg6: memref<128x256xf32, #tpu.memory_space<vmem>>) attributes {dimension_semantics = [#tpu.dimension_semantics<parallel>], iteration_bounds = array<i64: 1>, scalar_prefetch = 0 : i64, scratch_operands = 0 : i64, tpu.core_type = #tpu.core_type<tc>, window_params = [{transform_indices = @transform_0, window_bounds = array<i64: 128, 256>}, {pipeline_mode = #tpu.pipeline_mode<synchronous>, transform_indices = @transform_1, window_bounds = array<i64: 256, 128>}, {pipeline_mode = #tpu.pipeline_mode<synchronous>, transform_indices = @transform_2, window_bounds = array<i64: 1, 128>}, {pipeline_mode = #tpu.pipeline_mode<synchronous>, transform_indices = @transform_3, window_bounds = array<i64: 128, 256>}, {pipeline_mode = #tpu.pipeline_mode<synchronous>, transform_indices = @transform_4, window_bounds = array<i64: 1, 256>}, {transform_indices = @transform_5, window_bounds = array<i64: 128, 256>}]} {
    %c0 = arith.constant 0 : index
    %c0_0 = arith.constant 0 : index
    %0 = vector.load %arg1[%c0, %c0_0] : memref<128x256xbf16, #tpu.memory_space<vmem>>, vector<128x256xbf16>
    %c0_1 = arith.constant 0 : index
    %c0_2 = arith.constant 0 : index
    %1 = vector.load %arg2[%c0_1, %c0_2] : memref<256x128xbf16, #tpu.memory_space<vmem>>, vector<256x128xbf16>
    %cst = arith.constant dense<0.000000e+00> : vector<128x128xf32>
    %2 = tpu.matmul %0, %1, %cst {dimension_numbers = #tpu.dot_dimension_numbers<[1], [0], [0], [1], [0, 0, 1, 1], [], []>} : vector<128x256xbf16>, vector<256x128xbf16>, vector<128x128xf32> -> vector<128x128xf32>
    %c0_3 = arith.constant 0 : index
    %c0_4 = arith.constant 0 : index
    %3 = vector.load %arg3[%c0_3, %c0_4] : memref<1x128xf32, #tpu.memory_space<vmem>>, vector<1x128xf32>
    %4 = vector.broadcast %3 : vector<1x128xf32> to vector<128x128xf32>
    %5 = arith.addf %2, %4 : vector<128x128xf32>
    %cst_5 = arith.constant 0.636619746 : f32
    %6 = math.sqrt %cst_5 : f32
    %cst_6 = arith.constant 5.000000e-01 : f32
    %7 = vector.broadcast %cst_6 : f32 to vector<128x128xf32>
    %8 = arith.mulf %7, %5 : vector<128x128xf32>
    %cst_7 = arith.constant 4.471500e-02 : f32
    %9 = vector.broadcast %cst_7 : f32 to vector<128x128xf32>
    %10 = arith.mulf %9, %5 : vector<128x128xf32>
    %11 = arith.mulf %10, %5 : vector<128x128xf32>
    %12 = arith.mulf %11, %5 : vector<128x128xf32>
    %13 = arith.addf %5, %12 : vector<128x128xf32>
    %14 = vector.broadcast %6 : f32 to vector<128x128xf32>
    %15 = arith.mulf %14, %13 : vector<128x128xf32>
    %16 = math.tanh %15 : vector<128x128xf32>
    %cst_8 = arith.constant 1.000000e+00 : f32
    %17 = vector.broadcast %cst_8 : f32 to vector<128x128xf32>
    %18 = arith.addf %17, %16 : vector<128x128xf32>
    %19 = arith.mulf %8, %18 : vector<128x128xf32>
    %20 = arith.truncf %19 : vector<128x128xf32> to vector<128x128xbf16>
    %c0_9 = arith.constant 0 : index
    %c0_10 = arith.constant 0 : index
    %21 = vector.load %arg4[%c0_9, %c0_10] : memref<128x256xbf16, #tpu.memory_space<vmem>>, vector<128x256xbf16>
    %cst_11 = arith.constant dense<0.000000e+00> : vector<128x256xf32>
    %22 = tpu.matmul %20, %21, %cst_11 {dimension_numbers = #tpu.dot_dimension_numbers<[1], [0], [0], [1], [0, 0, 1, 1], [], []>} : vector<128x128xbf16>, vector<128x256xbf16>, vector<128x256xf32> -> vector<128x256xf32>
    %c0_12 = arith.constant 0 : index
    %c0_13 = arith.constant 0 : index
    %23 = vector.load %arg5[%c0_12, %c0_13] : memref<1x256xf32, #tpu.memory_space<vmem>>, vector<1x256xf32>
    %24 = vector.broadcast %23 : vector<1x256xf32> to vector<128x256xf32>
    %25 = arith.addf %22, %24 : vector<128x256xf32>
    %c0_14 = arith.constant 0 : index
    %c0_15 = arith.constant 0 : index
    %26 = vector.load %arg6[%c0_14, %c0_15] : memref<128x256xf32, #tpu.memory_space<vmem>>, vector<128x256xf32>
    tpu.vector_store %arg6[%c0_14, %c0_15], %25 {strides = array<i32>} : memref<128x256xf32, #tpu.memory_space<vmem>>, vector<128x256xf32>,
    return
  }
  func.func @transform_0(%arg0: i32) -> (i32, i32) {
    %c0_i32 = arith.constant 0 : i32
    %c0_i32_0 = arith.constant 0 : i32
    return %arg0, %c0_i32 : i32, i32
  }
  func.func @transform_1(%arg0: i32) -> (i32, i32) {
    %c0_i32 = arith.constant 0 : i32
    %c0_i32_0 = arith.constant 0 : i32
    %c0_i32_1 = arith.constant 0 : i32
    return %c0_i32, %c0_i32_0 : i32, i32
  }
  func.func @transform_2(%arg0: i32) -> (i32, i32) {
    %c0_i32 = arith.constant 0 : i32
    %c0_i32_0 = arith.constant 0 : i32
    %c0_i32_1 = arith.constant 0 : i32
    return %c0_i32, %c0_i32_0 : i32, i32
  }
  func.func @transform_3(%arg0: i32) -> (i32, i32) {
    %c0_i32 = arith.constant 0 : i32
    %c0_i32_0 = arith.constant 0 : i32
    %c0_i32_1 = arith.constant 0 : i32
    return %c0_i32, %c0_i32_0 : i32, i32
  }
  func.func @transform_4(%arg0: i32) -> (i32, i32) {
    %c0_i32 = arith.constant 0 : i32
    %c0_i32_0 = arith.constant 0 : i32
    %c0_i32_1 = arith.constant 0 : i32
    return %c0_i32, %c0_i32_0 : i32, i32
  }
  func.func @transform_5(%arg0: i32) -> (i32, i32) {
    %c0_i32 = arith.constant 0 : i32
    %c0_i32_0 = arith.constant 0 : i32
    return %arg0, %c0_i32 : i32, i32
  }
}

</mosaic_0001>

<bundles_post_ra>
// kernel: tpu_custom_call.1
= control target key start
LH: loop header
LB: loop body
LE: loop exit
PB: predicated region body
PF: predicated region fallthrough
CT: control target
= control target key end

     0   :  { %10 = vsyncpa [#allocation3], 0  ;;  %s1339_s0 = inlined_call_operand.hbm [shape: bf16[128,256], index: 0, kind: input, shape index: {}]   ;;  %s1340_s1 = inlined_call_operand.hbm [shape: bf16[256,128], index: 1, kind: input, shape index: {}]   ;;  %s1341_s2 = inlined_call_operand.vmem [shape: f32[1,128], index: 2, kind: input, shape index: {}]   ;;  %s1342_s3 = inlined_call_operand.hbm [shape: bf16[128,256], index: 3, kind: input, shape index: {}]   ;;  %s1343_s4 = inlined_call_operand.vmem [shape: f32[1,256], index: 4, kind: input, shape index: {}]   ;;  %s1344_s5 = inlined_call_operand.hbm [shape: f32[128,256], index: 5, kind: output, shape index: {}]  }
   0x1   :  { %11 = vsyncpa [#allocation6], 0 }
   0x2   :  { %12 = vsyncpa [#allocation4], 0  ;;  %s1120_s18 = smov [#allocation5]  }
   0x3   :  { %s30_s19 = sshll.u32 %s1120_s18, 4  ;;  %s31_s19 = int_to_ptr.vmem [resolvable:$true] %s30_s19 }
   0x4   :  { %s1042_s20 = scalar_lea.vmem %s31_s19, 2048  ;;  %p1047_p1 = scmp.lt.s32.totalorder %s31_s19, %s31_s19 }
   0x5   :  { %p1043_p0 = scmp.ne.s32.totalorder %s31_s19, %s1042_s20  ;;  %p1048_p2 = scmp.lt.s32.totalorder %s1042_s20, %s1042_s20 }
   0x7   :  { %p1049_p3 = por %p1048_p2, %p1047_p1 }
   0x9   :  { %p1050_p4 = pnand %p1049_p3, %p1043_p0 }
   0xb   :  { %1053 = shalt.err (!%p1050_p4)
}
   0xc   :  { %s1121_s21 = smov 64   ;;  %s1122_s22 = smov 4  }
   0xd   :  { %36 = dma.hbm_to_vmem [thread:$0]  %s1340_s1, 2048, %s31_s19, [#allocation6], %s1121_s21, %s1121_s21, %s1122_s22  }
   0xe   :  { %s1123_s25 = smov [#allocation2]  }
   0xf   :  { %s18_s26 = sshll.u32 %s1123_s25, 4  ;;  %s19_s26 = int_to_ptr.vmem [resolvable:$true] %s18_s26 }
  0x10   :  { %s1062_s27 = scalar_lea.vmem %s19_s26, 2048  ;;  %p1067_p6 = scmp.lt.s32.totalorder %s19_s26, %s19_s26 }
  0x11   :  { %p1063_p5 = scmp.ne.s32.totalorder %s19_s26, %s1062_s27  ;;  %p1068_p7 = scmp.lt.s32.totalorder %s1062_s27, %s1062_s27 }
  0x13   :  { %p1069_p8 = por %p1068_p7, %p1067_p6 }
  0x15   :  { %p1070_p9 = pnand %p1069_p8, %p1063_p5 }
  0x17   :  { %1073 = shalt.err (!%p1070_p9)
}
  0x18   :  { %s1124_s28 = smov 128   ;;  %s1125_s29 = smov 8  }
  0x19   :  { %24 = dma.hbm_to_vmem [thread:$0]  %s1339_s0, 2048, %s19_s26, [#allocation3], %s1124_s28, %s1124_s28, %s1125_s29  }
  0x1a   :  { %s1126_s7 = smov [#allocation7]  }
  0x1b   :  { %s44_s8 = sshll.u32 %s1126_s7, 4  ;;  %s45_s8 = int_to_ptr.vmem [resolvable:$true] %s44_s8 }
  0x1c   :  { %s1082_s1 = scalar_lea.vmem %s45_s8, 2048  ;;  %p1087_p11 = scmp.lt.s32.totalorder %s45_s8, %s45_s8 }
  0x1d   :  { %p1083_p10 = scmp.ne.s32.totalorder %s45_s8, %s1082_s1  ;;  %p1088_p12 = scmp.lt.s32.totalorder %s1082_s1, %s1082_s1 }
  0x1f   :  { %p1089_p13 = por %p1088_p12, %p1087_p11 }
  0x21   :  { %p1090_p0 = pnand %p1089_p13, %p1083_p10 }
  0x23   :  { %1093 = shalt.err (!%p1090_p0)
}
  0x24   :  { %50 = dma.hbm_to_vmem [thread:$0]  %s1342_s3, 2048, %s45_s8, [#allocation6], %s1124_s28, %s1124_s28, %s1125_s29  }
  0x25   :  { %1114 = dma.done.wait [#allocation3], 2048  }
  0x26   :  { %1115 = vsyncadd [#allocation3], 4294965248 }
  0x27   :  { %1116 = dma.done.wait [#allocation6], 4096  }
  0x28   :  { %1117 = vsyncadd [#allocation6], 4294963200  ;;  %v938_v0 = vld [vmem:[#allocation5 + $0x78] sm:$0xff]   ;;  %v940_v2 = vld [vmem:[#allocation5 + $0x70] sm:$0xff]   ;;  %v1127_v48 = vmov 0  }
  0x29   :  { %v939_v1 = vld [vmem:[#allocation5 + $0x38] sm:$0xff]   ;;  %863 = vmatprep.subr.bf16.mxu0 %v938_v0  ;;  %v941_v3 = vld [vmem:[#allocation5 + $0x30] sm:$0xff]   ;;  %v942_v4 = vld [vmem:[#allocation5 + $0x68] sm:$0xff]   ;;  %683 = vmatprep.mubr.bf16.mxu1 %v1127_v48 }
  0x2a   :  { %864 = vmatpush3.bf16.msra.mxu0 %v939_v1  ;;  %v943_v5 = vld [vmem:[#allocation5 + $0x28] sm:$0xff]   ;;  %v944_v6 = vld [vmem:[#allocation5 + $0x60] sm:$0xff]   ;;  %v946_v8 = vld [vmem:[#allocation5 + $0x58] sm:$0xff]  }
  0x2b   :  { %865 = vmatprep.subr.bf16.mxu0 %v940_v2  ;;  %v945_v7 = vld [vmem:[#allocation5 + $0x20] sm:$0xff]   ;;  %v947_v9 = vld [vmem:[#allocation5 + $0x18] sm:$0xff]   ;;  %v948_v10 = vld [vmem:[#allocation5 + $0x50] sm:$0xff]  }
  0x2c   :  { %v956_v11 = vld [vmem:[#allocation2 + $0x4] ss:$8 sps:$4 sm:$0xff]   ;;  %v949_v12 = vld [vmem:[#allocation5 + $0x10] sm:$0xff]   ;;  %v954_v17 = vld [vmem:[#allocation2] ss:$8 sps:$4 sm:$0xff]  }
  0x2d   :  { %326 = vmatprep.mubr.bf16.mxu0 %v956_v11  ;;  %v950_v13 = vld [vmem:[#allocation5 + $0x48] sm:$0xff]   ;;  %v952_v15 = vld [vmem:[#allocation5 + $0x40] sm:$0xff]   ;;  %v957_v18 = vld [vmem:[#allocation2 + $0x14] ss:$8 sps:$4 sm:$0xff]  }
  0x2e   :  { %866 = vmatpush3.bf16.msra.mxu0 %v941_v3  ;;  %v951_v14 = vld [vmem:[#allocation5 + $0x8] sm:$0xff]   ;;  %v953_v16 = vld [vmem:[#allocation5] sm:$0xff]   ;;  %v959_v19 = vld [vmem:[#allocation2 + $0x10] ss:$8 sps:$4 sm:$0xff]  }
  0x2f   :  { %867 = vmatprep.subr.bf16.mxu0 %v942_v4  ;;  %v960_v20 = vld [vmem:[#allocation2 + $0x24] ss:$8 sps:$4 sm:$0xff]   ;;  %v962_v21 = vld [vmem:[#allocation2 + $0x20] ss:$8 sps:$4 sm:$0xff]   ;;  %v963_v22 = vld [vmem:[#allocation2 + $0x34] ss:$8 sps:$4 sm:$0xff]  }
  0x30   :  { %v965_v23 = vld [vmem:[#allocation2 + $0x30] ss:$8 sps:$4 sm:$0xff]   ;;  %v966_v24 = vld [vmem:[#allocation2 + $0x44] ss:$8 sps:$4 sm:$0xff]   ;;  %v968_v25 = vld [vmem:[#allocation2 + $0x40] ss:$8 sps:$4 sm:$0xff]  }
  0x31   :  { %v969_v26 = vld [vmem:[#allocation2 + $0x54] ss:$8 sps:$4 sm:$0xff]   ;;  %v971_v27 = vld [vmem:[#allocation2 + $0x50] ss:$8 sps:$4 sm:$0xff]   ;;  %v972_v28 = vld [vmem:[#allocation2 + $0x64] ss:$8 sps:$4 sm:$0xff]  }
  0x32   :  { %868 = vmatpush3.bf16.msra.mxu0 %v943_v5  ;;  %v974_v29 = vld [vmem:[#allocation2 + $0x60] ss:$8 sps:$4 sm:$0xff]   ;;  %v975_v30 = vld [vmem:[#allocation2 + $0x74] ss:$8 sps:$4 sm:$0xff]   ;;  %v977_v31 = vld [vmem:[#allocation2 + $0x70] ss:$8 sps:$4 sm:$0xff]  }
  0x33   :  { %869 = vmatprep.subr.bf16.mxu0 %v944_v6  ;;  %v978_v32 = vld [vmem:[#allocation7 + $0x74] ss:$8 sps:$4 sm:$0xff]   ;;  %v980_v33 = vld [vmem:[#allocation7 + $0x70] ss:$8 sps:$4 sm:$0xff]   ;;  %v981_v34 = vld [vmem:[#allocation7 + $0x64] ss:$8 sps:$4 sm:$0xff]  }
  0x34   :  { %651 = vmatprep.subr.bf16.mxu1 %v978_v32  ;;  %v983_v35 = vld [vmem:[#allocation7 + $0x60] ss:$8 sps:$4 sm:$0xff]   ;;  %v984_v36 = vld [vmem:[#allocation7 + $0x54] ss:$8 sps:$4 sm:$0xff]   ;;  %v986_v37 = vld [vmem:[#allocation7 + $0x50] ss:$8 sps:$4 sm:$0xff]  }
  0x35   :  { %652 = vmatpush1.bf16.msra.mxu1 %v980_v33  ;;  %v987_v38 = vld [vmem:[#allocation7 + $0x44] ss:$8 sps:$4 sm:$0xff]   ;;  %v989_v39 = vld [vmem:[#allocation7 + $0x40] ss:$8 sps:$4 sm:$0xff]   ;;  %v990_v40 = vld [vmem:[#allocation7 + $0x34] ss:$8 sps:$4 sm:$0xff]  }
  0x36   :  { %870 = vmatpush3.bf16.msra.mxu0 %v945_v7  ;;  %653 = vmatprep.subr.bf16.mxu1 %v981_v34  ;;  %v992_v41 = vld [vmem:[#allocation7 + $0x30] ss:$8 sps:$4 sm:$0xff]   ;;  %v993_v42 = vld [vmem:[#allocation7 + $0x24] ss:$8 sps:$4 sm:$0xff]   ;;  %v995_v43 = vld [vmem:[#allocation7 + $0x20] ss:$8 sps:$4 sm:$0xff]  }
  0x37   :  { %871 = vmatprep.subr.bf16.mxu0 %v946_v8  ;;  %v996_v44 = vld [vmem:[#allocation7 + $0x14] ss:$8 sps:$4 sm:$0xff]   ;;  %v998_v45 = vld [vmem:[#allocation7 + $0x10] ss:$8 sps:$4 sm:$0xff]   ;;  %v999_v46 = vld [vmem:[#allocation7 + $0x4] ss:$8 sps:$4 sm:$0xff]  }
  0x38   :  { %v1001_v47 = vld [vmem:[#allocation7] ss:$8 sps:$4 sm:$0xff]  }
  0x39   :  { %654 = vmatpush1.bf16.msra.mxu1 %v983_v35  ;;  %v1174_v50 = vld [vmem:[%s1341_s2] ss:$0 sm:$0xff] }
  0x3a   :  { %872 = vmatpush3.bf16.msra.mxu0 %v947_v9  ;;  %655 = vmatprep.subr.bf16.mxu1 %v984_v36 }
  0x3b   :  { %873 = vmatprep.subr.bf16.mxu0 %v948_v10 }
  0x3d   :  { %656 = vmatpush1.bf16.msra.mxu1 %v986_v37 }
  0x3e   :  { %874 = vmatpush3.bf16.msra.mxu0 %v949_v12  ;;  %657 = vmatprep.subr.bf16.mxu1 %v987_v38 }
  0x3f   :  { %875 = vmatprep.subr.bf16.mxu0 %v950_v13 }
  0x41   :  { %658 = vmatpush1.bf16.msra.mxu1 %v989_v39 }
  0x42   :  { %876 = vmatpush3.bf16.msra.mxu0 %v951_v14  ;;  %659 = vmatprep.subr.bf16.mxu1 %v990_v40 }
  0x43   :  { %877 = vmatprep.subr.bf16.mxu0 %v952_v15 }
  0x45   :  { %660 = vmatpush1.bf16.msra.mxu1 %v992_v41 }
  0x46   :  { %878 = vmatpush3.bf16.msra.mxu0 %v953_v16  ;;  %661 = vmatprep.subr.bf16.mxu1 %v993_v42 }
  0x49   :  { %327 = vmatmul.mubr.bf16.vlgmr.msra.gmra.mxu0 %v954_v17  ;;  %662 = vmatpush1.bf16.msra.mxu1 %v995_v43 }
  0x4a   :  { %334 = vmatprep.mubr.bf16.mxu0 %v957_v18  ;;  %663 = vmatprep.subr.bf16.mxu1 %v996_v44 }
  0x4d   :  { %664 = vmatpush1.bf16.msra.mxu1 %v998_v45 }
  0x4e   :  { %665 = vmatprep.subr.bf16.mxu1 %v999_v46 }
  0x51   :  { %335 = vmatmul.mubr.bf16.gmra.mxu0 %v959_v19  ;;  %666 = vmatpush1.bf16.msra.mxu1 %v1001_v47 }
  0x52   :  { %342 = vmatprep.mubr.bf16.mxu0 %v960_v20 }
  0x59   :  { %343 = vmatmul.mubr.bf16.gmra.mxu0 %v962_v21 }
  0x5a   :  { %350 = vmatprep.mubr.bf16.mxu0 %v963_v22 }
  0x61   :  { %351 = vmatmul.mubr.bf16.gmra.mxu0 %v965_v23 }
  0x62   :  { %358 = vmatprep.mubr.bf16.mxu0 %v966_v24 }
  0x69   :  { %359 = vmatmul.mubr.bf16.gmra.mxu0 %v968_v25 }
  0x6a   :  { %366 = vmatprep.mubr.bf16.mxu0 %v969_v26 }
  0x71   :  { %367 = vmatmul.mubr.bf16.gmra.mxu0 %v971_v27 }
  0x72   :  { %374 = vmatprep.mubr.bf16.mxu0 %v972_v28 }
  0x79   :  { %375 = vmatmul.mubr.bf16.gmra.mxu0 %v974_v29 }
  0x7a   :  { %382 = vmatprep.mubr.bf16.mxu0 %v975_v30 }
  0x81   :  { %383 = vmatmul.mubr.bf16.gmra.mxu0 %v977_v31 }
 0x109   :  { %v879_v49 = vpop.f32.mrf.mxu0 }
 0x10b   :  { %v880_v51 = vpop.f32.mrf.mxu0 }
 0x10c   :  { %v881_v52 = vadd.f32 %v880_v51, %v879_v49 }
 0x10d   :  { %v882_v53 = vpop.f32.mrf.mxu0 }
 0x10e   :  { %v1177_v54 = vadd.f32 %v881_v52, %v1174_v50 }
 0x10f   :  { %v883_v55 = vpop.f32.mrf.mxu0 }
 0x110   :  { %v407_v56 = vmul.f32 0.044715, %v1177_v54  ;;  %v884_v57 = vadd.f32 %v883_v55, %v882_v53 }
 0x111   :  { %v885_v58 = vpop.f32.mrf.mxu0 }
 0x112   :  { %v423_v59 = vmul.f32 %v407_v56, %v1177_v54  ;;  %v332_v60 = vadd.f32 %v884_v57, %v1174_v50  ;;  %v391_v57 = vmul.f32 0.5, %v1177_v54 }
 0x113   :  { %v886_v61 = vpop.f32.mrf.mxu0 }
 0x114   :  { %v408_v62 = vmul.f32 0.044715, %v332_v60  ;;  %v887_v63 = vadd.f32 %v886_v61, %v885_v58  ;;  %v439_v0 = vmul.f32 %v423_v59, %v1177_v54  ;;  %v392_v58 = vmul.f32 0.5, %v332_v60 }
 0x115   :  { %v888_v1 = vpop.f32.mrf.mxu0 }
 0x116   :  { %v424_v2 = vmul.f32 %v408_v62, %v332_v60  ;;  %v1184_v3 = vadd.f32 %v887_v63, %v1174_v50  ;;  %v455_v4 = vadd.f32 %v439_v0, %v1177_v54 }
 0x117   :  { %v889_v5 = vpop.f32.mrf.mxu0 }
 0x118   :  { %v409_v6 = vmul.f32 0.044715, %v1184_v3  ;;  %v890_v7 = vadd.f32 %v889_v5, %v888_v1  ;;  %v440_v8 = vmul.f32 %v424_v2, %v332_v60  ;;  %v471_v9 = vmul.f32 0.7978845, %v455_v4 }
 0x119   :  { %v891_v10 = vpop.f32.mrf.mxu0 }
 0x11a   :  { %v425_v11 = vmul.f32 %v409_v6, %v1184_v3  ;;  %v1190_v12 = vadd.f32 %v890_v7, %v1174_v50  ;;  %v456_v13 = vadd.f32 %v440_v8, %v332_v60  ;;  %1002 = vtanh.f32 %v471_v9 }
 0x11b   :  { %v892_v14 = vpop.f32.mrf.mxu0 }
 0x11c   :  { %v410_v15 = vmul.f32 0.044715, %v1190_v12  ;;  %v893_v16 = vadd.f32 %v892_v14, %v891_v10  ;;  %v472_v17 = vmul.f32 0.7978845, %v456_v13  ;;  %v441_v19 = vmul.f32 %v425_v11, %v1184_v3 }
 0x11d   :  { %v894_v18 = vpop.f32.mrf.mxu0 }
 0x11e   :  { %v426_v20 = vmul.f32 %v410_v15, %v1190_v12  ;;  %v1196_v21 = vadd.f32 %v893_v16, %v1174_v50  ;;  %1004 = vtanh.f32 %v472_v17  ;;  %v457_v23 = vadd.f32 %v441_v19, %v1184_v3 }
 0x11f   :  { %v895_v22 = vpop.f32.mrf.mxu0 }
 0x120   :  { %v411_v24 = vmul.f32 0.044715, %v1196_v21  ;;  %v896_v25 = vadd.f32 %v895_v22, %v894_v18  ;;  %v442_v26 = vmul.f32 %v426_v20, %v1190_v12  ;;  %v473_v28 = vmul.f32 0.7978845, %v457_v23 }
 0x121   :  { %v897_v27 = vpop.f32.mrf.mxu0  ;;  %v393_v22 = vmul.f32 0.5, %v1184_v3  ;;  %v394_v23 = vmul.f32 0.5, %v1190_v12 }
 0x122   :  { %v427_v29 = vmul.f32 %v411_v24, %v1196_v21  ;;  %v1203_v30 = vadd.f32 %v896_v25, %v1174_v50  ;;  %v458_v31 = vadd.f32 %v442_v26, %v1190_v12  ;;  %1006 = vtanh.f32 %v473_v28 }
 0x123   :  { %v898_v32 = vpop.f32.mrf.mxu0 }
 0x124   :  { %v412_v33 = vmul.f32 0.044715, %v1203_v30  ;;  %v899_v34 = vadd.f32 %v898_v32, %v897_v27  ;;  %v474_v35 = vmul.f32 0.7978845, %v458_v31  ;;  %v443_v37 = vmul.f32 %v427_v29, %v1196_v21 }
 0x125   :  { %v900_v36 = vpop.f32.mrf.mxu0 }
 0x126   :  { %v428_v38 = vmul.f32 %v412_v33, %v1203_v30  ;;  %v1210_v39 = vadd.f32 %v899_v34, %v1174_v50  ;;  %1008 = vtanh.f32 %v474_v35  ;;  %v459_v42 = vadd.f32 %v443_v37, %v1196_v21 }
 0x127   :  { %v1003_v40 = vpop.eup %1002  ;;  %v901_v41 = vpop.f32.mrf.mxu0 }
 0x128   :  { %v413_v43 = vmul.f32 0.044715, %v1210_v39  ;;  %v902_v44 = vadd.f32 %v901_v41, %v900_v36  ;;  %v444_v45 = vmul.f32 %v428_v38, %v1203_v30  ;;  %v503_v47 = vadd.f32 1.0, %v1003_v40 }
 0x129   :  { %v903_v46 = vpop.f32.mrf.mxu0  ;;  %v475_v49 = vmul.f32 0.7978845, %v459_v42 }
 0x12a   :  { %v429_v51 = vmul.f32 %v413_v43, %v1210_v39  ;;  %v1217_v52 = vadd.f32 %v902_v44, %v1174_v50  ;;  %v460_v53 = vadd.f32 %v444_v45, %v1203_v30  ;;  %v519_v1 = vmul.f32 %v503_v47, %v391_v57 }
 0x12b   :  { %v1005_v55 = vpop.eup %1004  ;;  %v904_v56 = vpop.f32.mrf.mxu0  ;;  %1010 = vtanh.f32 %v475_v49 }
 0x12c   :  { %v414_v59 = vmul.f32 0.044715, %v1217_v52  ;;  %v905_v61 = vadd.f32 %v904_v56, %v903_v46  ;;  %v504_v62 = vadd.f32 1.0, %v1005_v55  ;;  %v476_v63 = vmul.f32 0.7978845, %v460_v53 }
 0x12d   :  { %v906_v0 = vpop.f32.mrf.mxu0  ;;  %v445_v2 = vmul.f32 %v429_v51, %v1210_v39  ;;  %v395_v51 = vmul.f32 0.5, %v1196_v21  ;;  %v396_v53 = vmul.f32 0.5, %v1203_v30 }
 0x12e   :  { %v430_v4 = vmul.f32 %v414_v59, %v1217_v52  ;;  %v1225_v5 = vadd.f32 %v905_v61, %v1174_v50  ;;  %v520_v6 = vmul.f32 %v504_v62, %v392_v58  ;;  %1012 = vtanh.f32 %v476_v63 }
 0x12f   :  { %v907_v7 = vpop.f32.mrf.mxu0  ;;  %v461_v54 = vadd.f32 %v445_v2, %v1210_v39  ;;  %v1007_v60 = vpop.eup %1006 }
 0x130   :  { %v415_v8 = vmul.f32 0.044715, %v1225_v5  ;;  %v908_v9 = vadd.f32 %v907_v7, %v906_v0  ;;  %v535_v10 = vpack.c.bf16 %v520_v6, %v519_v1  ;;  %v446_v11 = vmul.f32 %v430_v4, %v1217_v52 }
 0x131   :  { %v909_v13 = vpop.f32.mrf.mxu0  ;;  %v505_v14 = vadd.f32 1.0, %v1007_v60  ;;  %v477_v15 = vmul.f32 0.7978845, %v461_v54 }
 0x132   :  { %v431_v16 = vmul.f32 %v415_v8, %v1225_v5  ;;  %v1232_v17 = vadd.f32 %v908_v9, %v1174_v50  ;;  %684 = vmatmul.mubr.bf16.vlgmr.msra.gmra.mxu1 %v535_v10  ;;  %v462_v18 = vadd.f32 %v446_v11, %v1217_v52 }
 0x133   :  { %v1009_v19 = vpop.eup %1008  ;;  %v910_v20 = vpop.f32.mrf.mxu0  ;;  %693 = vmatprep.mubr.bf16.mxu1 %v1127_v48  ;;  %1014 = vtanh.f32 %v477_v15  ;;  %v521_v29 = vmul.f32 %v505_v14, %v393_v22 }
 0x134   :  { %v416_v24 = vmul.f32 0.044715, %v1232_v17  ;;  %v911_v25 = vadd.f32 %v910_v20, %v909_v13  ;;  %v506_v26 = vadd.f32 1.0, %v1009_v19  ;;  %v478_v27 = vmul.f32 0.7978845, %v462_v18 }
 0x135   :  { %v912_v28 = vpop.f32.mrf.mxu0  ;;  %v447_v31 = vmul.f32 %v431_v16, %v1225_v5  ;;  %v397_v16 = vmul.f32 0.5, %v1210_v39  ;;  %v398_v18 = vmul.f32 0.5, %v1217_v52 }
 0x136   :  { %v432_v32 = vmul.f32 %v416_v24, %v1232_v17  ;;  %v1242_v33 = vadd.f32 %v911_v25, %v1174_v50  ;;  %v522_v34 = vmul.f32 %v506_v26, %v394_v23  ;;  %1016 = vtanh.f32 %v478_v27 }
 0x137   :  { %v913_v3 = vpop.f32.mrf.mxu0  ;;  %v463_v12 = vadd.f32 %v447_v31, %v1225_v5 }
 0x138   :  { %v1011_v35 = vpop.eup %1010  ;;  %v417_v36 = vmul.f32 0.044715, %v1242_v33  ;;  %v914_v37 = vadd.f32 %v913_v3, %v912_v28  ;;  %v536_v38 = vpack.c.bf16 %v522_v34, %v521_v29  ;;  %v448_v40 = vmul.f32 %v432_v32, %v1232_v17 }
 0x139   :  { %v915_v41 = vpop.f32.mrf.mxu0  ;;  %v507_v42 = vadd.f32 1.0, %v1011_v35  ;;  %v479_v43 = vmul.f32 0.7978845, %v463_v12 }
 0x13a   :  { %v433_v44 = vmul.f32 %v417_v36, %v1242_v33  ;;  %v1249_v45 = vadd.f32 %v914_v37, %v1174_v50  ;;  %694 = vmatmul.mubr.bf16.gmra.mxu1 %v536_v38  ;;  %v464_v46 = vadd.f32 %v448_v40, %v1232_v17 }
 0x13b   :  { %v1013_v47 = vpop.eup %1012  ;;  %v916_v49 = vpop.f32.mrf.mxu0  ;;  %703 = vmatprep.mubr.bf16.mxu1 %v1127_v48  ;;  %1018 = vtanh.f32 %v479_v43  ;;  %v523_v61 = vmul.f32 %v507_v42, %v395_v51  ;;  %v399_v42 = vmul.f32 0.5, %v1225_v5 }
 0x13c   :  { %v418_v55 = vmul.f32 0.044715, %v1249_v45  ;;  %v917_v56 = vadd.f32 %v916_v49, %v915_v41  ;;  %v508_v57 = vadd.f32 1.0, %v1013_v47  ;;  %v480_v58 = vmul.f32 0.7978845, %v464_v46 }
 0x13d   :  { %v918_v59 = vpop.f32.mrf.mxu0  ;;  %v449_v62 = vmul.f32 %v433_v44, %v1242_v33  ;;  %v400_v44 = vmul.f32 0.5, %v1232_v17  ;;  %v401_v17 = vmul.f32 0.5, %v1242_v33 }
 0x13e   :  { %v434_v63 = vmul.f32 %v418_v55, %v1249_v45  ;;  %v1259_v0 = vadd.f32 %v917_v56, %v1174_v50  ;;  %v524_v1 = vmul.f32 %v508_v57, %v396_v53  ;;  %1020 = vtanh.f32 %v480_v58 }
 0x13f   :  { %v919_v21 = vpop.f32.mrf.mxu0  ;;  %v465_v30 = vadd.f32 %v449_v62, %v1242_v33 }
 0x140   :  { %v1015_v2 = vpop.eup %1014  ;;  %v419_v4 = vmul.f32 0.044715, %v1259_v0  ;;  %v920_v6 = vadd.f32 %v919_v21, %v918_v59  ;;  %v537_v7 = vpack.c.bf16 %v524_v1, %v523_v61  ;;  %v450_v54 = vmul.f32 %v434_v63, %v1249_v45 }
 0x141   :  { %v921_v60 = vpop.f32.mrf.mxu0  ;;  %v509_v8 = vadd.f32 1.0, %v1015_v2  ;;  %v481_v9 = vmul.f32 0.7978845, %v465_v30  ;;  %v402_v63 = vmul.f32 0.5, %v1249_v45 }
 0x142   :  { %v435_v10 = vmul.f32 %v419_v4, %v1259_v0  ;;  %v1266_v11 = vadd.f32 %v920_v6, %v1174_v50  ;;  %704 = vmatmul.mubr.bf16.gmra.mxu1 %v537_v7  ;;  %v466_v13 = vadd.f32 %v450_v54, %v1249_v45 }
 0x143   :  { %v1017_v14 = vpop.eup %1016  ;;  %v922_v15 = vpop.f32.mrf.mxu0  ;;  %713 = vmatprep.mubr.bf16.mxu1 %v1127_v48  ;;  %1022 = vtanh.f32 %v481_v9  ;;  %v525_v25 = vmul.f32 %v509_v8, %v397_v16 }
 0x144   :  { %v420_v19 = vmul.f32 0.044715, %v1266_v11  ;;  %v923_v20 = vadd.f32 %v922_v15, %v921_v60  ;;  %v510_v22 = vadd.f32 1.0, %v1017_v14  ;;  %v482_v23 = vmul.f32 0.7978845, %v466_v13 }
 0x145   :  { %v924_v24 = vpop.f32.mrf.mxu0  ;;  %v451_v26 = vmul.f32 %v435_v10, %v1259_v0  ;;  %v403_v60 = vmul.f32 0.5, %v1259_v0  ;;  %v404_v8 = vmul.f32 0.5, %v1266_v11 }
 0x146   :  { %v436_v27 = vmul.f32 %v420_v19, %v1266_v11  ;;  %v1276_v28 = vadd.f32 %v923_v20, %v1174_v50  ;;  %v526_v29 = vmul.f32 %v510_v22, %v398_v18  ;;  %1024 = vtanh.f32 %v482_v23 }
 0x147   :  { %v925_v39 = vpop.f32.mrf.mxu0  ;;  %v467_v52 = vadd.f32 %v451_v26, %v1259_v0  ;;  %v561_v0 = vlaneseq }
 0x148   :  { %v1019_v31 = vpop.eup %1018  ;;  %v421_v32 = vmul.f32 0.044715, %v1276_v28  ;;  %v926_v34 = vadd.f32 %v925_v39, %v924_v24  ;;  %v538_v3 = vpack.c.bf16 %v526_v29, %v525_v25  ;;  %v452_v12 = vmul.f32 %v436_v27, %v1266_v11  ;;  %v559_v25 = vld [vmem:[%s1343_s4] sm:$0x3]  ;;  %s1128_s4 = smov [#allocation8]  }
 0x149   :  { %v483_v35 = vmul.f32 0.7978845, %v467_v52  ;;  %v511_v38 = vadd.f32 1.0, %v1019_v31  ;;  %v405_v16 = vmul.f32 0.5, %v1276_v28  ;;  %s801_s12 = sshll.u32 %s1128_s4, 4  ;;  %s802_s12 = int_to_ptr.vmem [resolvable:$true] %s801_s12 }
 0x14a   :  { %v437_v36 = vmul.f32 %v421_v32, %v1276_v28  ;;  %v388_v37 = vadd.f32 %v926_v34, %v1174_v50  ;;  %714 = vmatmul.mubr.bf16.gmra.mxu1 %v538_v3  ;;  %v468_v40 = vadd.f32 %v452_v12, %v1266_v11  ;;  %v562_v11 = vshrl.u32 %v561_v0, 7  ;;  %s1094_s13 = scalar_lea.vmem %s802_s12, 4096  ;;  %p1099_p2 = scmp.lt.s32.totalorder %s802_s12, %s802_s12 }
 0x14b   :  { %v1021_v41 = vpop.eup %1020  ;;  %723 = vmatprep.mubr.bf16.mxu1 %v1127_v48  ;;  %1026 = vtanh.f32 %v483_v35  ;;  %v527_v53 = vmul.f32 %v511_v38, %v399_v42  ;;  %p1095_p1 = scmp.ne.s32.totalorder %s802_s12, %s1094_s13  ;;  %p1100_p3 = scmp.lt.s32.totalorder %s1094_s13, %s1094_s13 }
 0x14c   :  { %v422_v43 = vmul.f32 0.044715, %v388_v37  ;;  %v512_v46 = vadd.f32 1.0, %v1021_v41  ;;  %v484_v47 = vmul.f32 0.7978845, %v468_v40  ;;  %v453_v49 = vmul.f32 %v437_v36, %v1276_v28 }
 0x14d   :  { %v406_v18 = vmul.f32 0.5, %v388_v37  ;;  %v563_v24 = vsub.s32 0, %v562_v11  ;;  %v567_v26 = vsub.s32 1, %v562_v11  ;;  %p1101_p4 = por %p1100_p3, %p1099_p2 }
 0x14e   :  { %v438_v51 = vmul.f32 %v422_v43, %v388_v37  ;;  %v528_v50 = vmul.f32 %v512_v46, %v400_v44  ;;  %1028 = vtanh.f32 %v484_v47  ;;  %v469_v55 = vadd.f32 %v453_v49, %v1276_v28 }
 0x14f   :  { %v1300_v27 = vrot.slane %v559_v25, %v563_v24  ;;  %v1302_v29 = vrot.slane %v559_v25, %v567_v26  ;;  %p1102_p5 = pnand %p1101_p4, %p1095_p1 }
 0x150   :  { %v1023_v56 = vpop.eup %1022  ;;  %v539_v57 = vpack.c.bf16 %v528_v50, %v527_v53  ;;  %v454_v58 = vmul.f32 %v438_v51, %v388_v37  ;;  %v485_v59 = vmul.f32 0.7978845, %v469_v55 }
 0x151   :  { %v513_v5 = vadd.f32 1.0, %v1023_v56 }
 0x152   :  { %724 = vmatmul.mubr.bf16.gmra.mxu1 %v539_v57  ;;  %v470_v61 = vadd.f32 %v454_v58, %v388_v37  ;;  %1030 = vtanh.f32 %v485_v59 }
 0x153   :  { %v1025_v62 = vpop.eup %1024  ;;  %733 = vmatprep.mubr.bf16.mxu1 %v1127_v48  ;;  %v529_v30 = vmul.f32 %v513_v5, %v401_v17 }
 0x154   :  { %v514_v1 = vadd.f32 1.0, %v1025_v62  ;;  %v486_v21 = vmul.f32 0.7978845, %v470_v61 }
 0x156   :  { %v530_v2 = vmul.f32 %v514_v1, %v402_v63  ;;  %1032 = vtanh.f32 %v486_v21 }
 0x158   :  { %v1027_v4 = vpop.eup %1026  ;;  %v540_v6 = vpack.c.bf16 %v530_v2, %v529_v30 }
 0x159   :  { %v515_v7 = vadd.f32 1.0, %v1027_v4 }
 0x15a   :  { %734 = vmatmul.mubr.bf16.gmra.mxu1 %v540_v6 }
 0x15b   :  { %v1029_v54 = vpop.eup %1028  ;;  %743 = vmatprep.mubr.bf16.mxu1 %v1127_v48  ;;  %v531_v33 = vmul.f32 %v515_v7, %v403_v60 }
 0x15c   :  { %v516_v9 = vadd.f32 1.0, %v1029_v54 }
 0x15e   :  { %v532_v10 = vmul.f32 %v516_v9, %v404_v8 }
 0x15f   :  { %v1031_v45 = vpop.eup %1030 }
 0x160   :  { %v541_v13 = vpack.c.bf16 %v532_v10, %v531_v33  ;;  %v517_v14 = vadd.f32 1.0, %v1031_v45 }
 0x162   :  { %744 = vmatmul.mubr.bf16.gmra.mxu1 %v541_v13  ;;  %v533_v20 = vmul.f32 %v517_v14, %v405_v16 }
 0x163   :  { %v1033_v15 = vpop.eup %1032  ;;  %753 = vmatprep.mubr.bf16.mxu1 %v1127_v48 }
 0x164   :  { %v518_v19 = vadd.f32 1.0, %v1033_v15 }
 0x166   :  { %v534_v22 = vmul.f32 %v518_v19, %v406_v18 }
 0x168   :  { %v542_v23 = vpack.c.bf16 %v534_v22, %v533_v20 }
 0x16a   :  { %754 = vmatmul.mubr.bf16.gmra.mxu1 %v542_v23 }
 0x1f2   :  { %v685_v48 = vpop.f32.mrf.mxu1 }
 0x1f3   :  { %v686_v28 = vadd.f32 %v685_v48, %v1300_v27 }
 0x1f4   :  { %v687_v39 = vpop.f32.mrf.mxu1 }
 0x1f5   :  { %764 = vst [vmem:[#allocation8] sm:$0xff] %v686_v28  ;;  %v688_v52 = vadd.f32 %v687_v39, %v1302_v29 }
 0x1f6   :  { %v689_v31 = vpop.f32.mrf.mxu1 }
 0x1f7   :  { %765 = vst [vmem:[#allocation8 + $0x8] sm:$0xff] %v688_v52  ;;  %v690_v32 = vadd.f32 %v689_v31, %v1300_v27 }
 0x1f8   :  { %v691_v34 = vpop.f32.mrf.mxu1 }
 0x1f9   :  { %766 = vst [vmem:[#allocation8 + $0x10] sm:$0xff] %v690_v32  ;;  %v692_v3 = vadd.f32 %v691_v34, %v1302_v29 }
 0x1fa   :  { %v695_v12 = vpop.f32.mrf.mxu1 }
 0x1fb   :  { %767 = vst [vmem:[#allocation8 + $0x18] sm:$0xff] %v692_v3  ;;  %v696_v35 = vadd.f32 %v695_v12, %v1300_v27 }
 0x1fc   :  { %v697_v36 = vpop.f32.mrf.mxu1 }
 0x1fd   :  { %768 = vst [vmem:[#allocation8 + $0x20] sm:$0xff] %v696_v35  ;;  %v698_v37 = vadd.f32 %v697_v36, %v1302_v29 }
 0x1fe   :  { %v699_v38 = vpop.f32.mrf.mxu1 }
 0x1ff   :  { %769 = vst [vmem:[#allocation8 + $0x28] sm:$0xff] %v698_v37  ;;  %v700_v40 = vadd.f32 %v699_v38, %v1300_v27 }
 0x200   :  { %v701_v41 = vpop.f32.mrf.mxu1 }
 0x201   :  { %770 = vst [vmem:[#allocation8 + $0x30] sm:$0xff] %v700_v40  ;;  %v702_v42 = vadd.f32 %v701_v41, %v1302_v29 }
 0x202   :  { %v705_v43 = vpop.f32.mrf.mxu1 }
 0x203   :  { %771 = vst [vmem:[#allocation8 + $0x38] sm:$0xff] %v702_v42  ;;  %v706_v44 = vadd.f32 %v705_v43, %v1300_v27 }
 0x204   :  { %v707_v46 = vpop.f32.mrf.mxu1 }
 0x205   :  { %772 = vst [vmem:[#allocation8 + $0x40] sm:$0xff] %v706_v44  ;;  %v708_v47 = vadd.f32 %v707_v46, %v1302_v29 }
 0x206   :  { %v709_v49 = vpop.f32.mrf.mxu1 }
 0x207   :  { %773 = vst [vmem:[#allocation8 + $0x48] sm:$0xff] %v708_v47  ;;  %v710_v51 = vadd.f32 %v709_v49, %v1300_v27 }
 0x208   :  { %v711_v53 = vpop.f32.mrf.mxu1 }
 0x209   :  { %774 = vst [vmem:[#allocation8 + $0x50] sm:$0xff] %v710_v51  ;;  %v712_v50 = vadd.f32 %v711_v53, %v1302_v29 }
 0x20a   :  { %v715_v55 = vpop.f32.mrf.mxu1 }
 0x20b   :  { %775 = vst [vmem:[#allocation8 + $0x58] sm:$0xff] %v712_v50  ;;  %v716_v56 = vadd.f32 %v715_v55, %v1300_v27 }
 0x20c   :  { %v717_v57 = vpop.f32.mrf.mxu1 }
 0x20d   :  { %776 = vst [vmem:[#allocation8 + $0x60] sm:$0xff] %v716_v56  ;;  %v718_v58 = vadd.f32 %v717_v57, %v1302_v29 }
 0x20e   :  { %v719_v59 = vpop.f32.mrf.mxu1 }
 0x20f   :  { %777 = vst [vmem:[#allocation8 + $0x68] sm:$0xff] %v718_v58  ;;  %v720_v5 = vadd.f32 %v719_v59, %v1300_v27 }
 0x210   :  { %v721_v61 = vpop.f32.mrf.mxu1 }
 0x211   :  { %778 = vst [vmem:[#allocation8 + $0x70] sm:$0xff] %v720_v5  ;;  %v722_v62 = vadd.f32 %v721_v61, %v1302_v29 }
 0x212   :  { %v725_v17 = vpop.f32.mrf.mxu1 }
 0x213   :  { %779 = vst [vmem:[#allocation8 + $0x78] sm:$0xff] %v722_v62  ;;  %v726_v63 = vadd.f32 %v725_v17, %v1300_v27 }
 0x214   :  { %v727_v1 = vpop.f32.mrf.mxu1 }
 0x215   :  { %780 = vst [vmem:[#allocation8 + $0x80] sm:$0xff] %v726_v63  ;;  %v728_v21 = vadd.f32 %v727_v1, %v1302_v29 }
 0x216   :  { %v729_v30 = vpop.f32.mrf.mxu1 }
 0x217   :  { %781 = vst [vmem:[#allocation8 + $0x88] sm:$0xff] %v728_v21  ;;  %v730_v2 = vadd.f32 %v729_v30, %v1300_v27 }
 0x218   :  { %v731_v4 = vpop.f32.mrf.mxu1 }
 0x219   :  { %782 = vst [vmem:[#allocation8 + $0x90] sm:$0xff] %v730_v2  ;;  %v732_v6 = vadd.f32 %v731_v4, %v1302_v29 }
 0x21a   :  { %v735_v7 = vpop.f32.mrf.mxu1 }
 0x21b   :  { %783 = vst [vmem:[#allocation8 + $0x98] sm:$0xff] %v732_v6  ;;  %v736_v54 = vadd.f32 %v735_v7, %v1300_v27 }
 0x21c   :  { %v737_v60 = vpop.f32.mrf.mxu1 }
 0x21d   :  { %784 = vst [vmem:[#allocation8 + $0xa0] sm:$0xff] %v736_v54  ;;  %v738_v8 = vadd.f32 %v737_v60, %v1302_v29 }
 0x21e   :  { %v739_v9 = vpop.f32.mrf.mxu1 }
 0x21f   :  { %785 = vst [vmem:[#allocation8 + $0xa8] sm:$0xff] %v738_v8  ;;  %v740_v33 = vadd.f32 %v739_v9, %v1300_v27 }
 0x220   :  { %v741_v10 = vpop.f32.mrf.mxu1 }
 0x221   :  { %786 = vst [vmem:[#allocation8 + $0xb0] sm:$0xff] %v740_v33  ;;  %v742_v45 = vadd.f32 %v741_v10, %v1302_v29 }
 0x222   :  { %v745_v13 = vpop.f32.mrf.mxu1 }
 0x223   :  { %787 = vst [vmem:[#allocation8 + $0xb8] sm:$0xff] %v742_v45  ;;  %v746_v14 = vadd.f32 %v745_v13, %v1300_v27 }
 0x224   :  { %v747_v15 = vpop.f32.mrf.mxu1 }
 0x225   :  { %788 = vst [vmem:[#allocation8 + $0xc0] sm:$0xff] %v746_v14  ;;  %v748_v16 = vadd.f32 %v747_v15, %v1302_v29 }
 0x226   :  { %v749_v18 = vpop.f32.mrf.mxu1 }
 0x227   :  { %789 = vst [vmem:[#allocation8 + $0xc8] sm:$0xff] %v748_v16  ;;  %v750_v19 = vadd.f32 %v749_v18, %v1300_v27 }
 0x228   :  { %v751_v20 = vpop.f32.mrf.mxu1 }
 0x229   :  { %790 = vst [vmem:[#allocation8 + $0xd0] sm:$0xff] %v750_v19  ;;  %v752_v22 = vadd.f32 %v751_v20, %v1302_v29 }
 0x22a   :  { %v755_v23 = vpop.f32.mrf.mxu1 }
 0x22b   :  { %791 = vst [vmem:[#allocation8 + $0xd8] sm:$0xff] %v752_v22  ;;  %v756_v0 = vadd.f32 %v755_v23, %v1300_v27 }
 0x22c   :  { %v757_v11 = vpop.f32.mrf.mxu1 }
 0x22d   :  { %792 = vst [vmem:[#allocation8 + $0xe0] sm:$0xff] %v756_v0  ;;  %v758_v24 = vadd.f32 %v757_v11, %v1302_v29 }
 0x22e   :  { %v759_v25 = vpop.f32.mrf.mxu1 }
 0x22f   :  { %793 = vst [vmem:[#allocation8 + $0xe8] sm:$0xff] %v758_v24  ;;  %v760_v26 = vadd.f32 %v759_v25, %v1300_v27 }
 0x230   :  { %v761_v48 = vpop.f32.mrf.mxu1 }
 0x231   :  { %794 = vst [vmem:[#allocation8 + $0xf0] sm:$0xff] %v760_v26  ;;  %v762_v28 = vadd.f32 %v761_v48, %v1302_v29 }
 0x233   :  { %795 = vst [vmem:[#allocation8 + $0xf8] sm:$0xff] %v762_v28 }
 0x234   :  { %1105 = shalt.err (!%p1102_p5)
}
 0x235   :  { %s1129_s14 = smov 256   ;;  %s1130_s15 = smov 16  }
 0x236   :  { %807 = dma.vmem_to_hbm [thread:$0]  %s802_s12, 4096, %s1344_s5, [#allocation4], %s1129_s14, %s1129_s14, %s1130_s15  }
 0x237   :  { %1118 = dma.done.wait [#allocation4], 4096  }
 0x238   :  { %1119 = vsyncadd [#allocation4], 4294963200 }
 0x239   :  { %811 = vsyncpa [#allocation3], 1 }
 0x23a   :  { %812 = vsyncpa [#allocation6], 1 }
 0x23b   :  { %813 = vsyncpa [#allocation4], 1 }

</bundles_post_ra>
